<compile_context>
chip_gen: v6e
topology: v6e:2x2x1
jax: 0.10.0
libtpu: 0.0.40
codegen_flags: <defaults>
</compile_context>

<pallas_src>
import jax
import jax.numpy as jnp
import numpy as np
from jax.experimental import pallas as pl
from jax.experimental.pallas import tpu as pltpu


def _circle_loss_kernel(logits_ref, labels_ref, out_ref):
    # Blocks are class-major: (C, tr), rows on the 128-lane axis.
    lg = logits_ref[...].astype(jnp.float32)             # (C, tr)
    lbf = labels_ref[...].astype(jnp.float32)            # (C, tr)
    is_pos = lbf > 0.5

    # s = (1 - 2*labels) * logits
    s = (1.0 - 2.0 * lbf) * lg

    # Select-mask instead of `s - label*inf`: exp of masked terms underflows to
    # exactly 0 either way (inf=1e12 in the reference), same numerics, fewer ops.
    neg_big = -3.0e38
    m_neg = jnp.maximum(
        jnp.max(jnp.where(is_pos, neg_big, s), axis=0, keepdims=True), 0.0)  # (1, tr)
    m_pos = jnp.maximum(
        jnp.max(jnp.where(is_pos, s, neg_big), axis=0, keepdims=True), 0.0)  # (1, tr)

    # One exp per element: each element feeds exactly one of the two LSE sums.
    e = jnp.exp(s - jnp.where(is_pos, m_pos, m_neg))                          # (C, tr)
    neg_sum = jnp.sum(jnp.where(is_pos, 0.0, e), axis=0, keepdims=True) + jnp.exp(-m_neg)
    pos_sum = jnp.sum(jnp.where(is_pos, e, 0.0), axis=0, keepdims=True) + jnp.exp(-m_pos)

    # Lane-dense (1, tr) store of per-row losses.
    out_ref[...] = (m_neg + jnp.log(neg_sum)) + (m_pos + jnp.log(pos_sum))


def _round_up(x, m):
    return (x + m - 1) // m * m


def _padded_bytes_per_lane(c, itemsize):
    # VMEM sublane padding: second-to-last dim pads to 8 for f32, 16 for bf16, ...
    sub = max(1, 32 // itemsize)
    return _round_up(c, sub) * itemsize


def multilabel_circle_loss_pallas(logits, labels, reduction="mean", inf=1e12,
                                  lane_block=None,
                                  vmem_budget_bytes=12 * 1024 * 1024):
    """Pallas TPU implementation of MultiLabelCircleLoss.forward.

    `inf` is kept for API parity; the kernel uses exact select-masking, which is
    numerically identical to the reference's arithmetic `-inf` mask for any
    sufficiently large `inf` (default 1e12).
    """
    del inf
    assert logits.shape == labels.shape, (logits.shape, labels.shape)
    lead = logits.shape[:-1]
    C = int(logits.shape[-1])
    R = int(np.prod(lead)) if lead else 1
    if reduction != "mean":
        assert len(lead) >= 2, (
            "reduction != 'mean' mirrors PyTorch loss.mean(1); needs >= 2 leading dims")

    # Class-major, lane-dense presentation (layout plumbing only).  The label
    # downcast to bf16 (exact for 0/1 labels) rides in this single pass.
    lg = jnp.reshape(logits, (R, C)).T                           # (C, R)
    lb = jnp.reshape(labels, (R, C)).T.astype(jnp.bfloat16)      # (C, R)

    # --- lane-tile sizing with explicit VMEM accounting ----------------------
    # Per lane of tile width: 2 inputs x 2 pipeline buffers (sublane-padded)
    # plus 2 output buffers ((1, tr) f32 pads to 8 sublanes).
    in_bpl = (_padded_bytes_per_lane(C, lg.dtype.itemsize)
              + _padded_bytes_per_lane(C, lb.dtype.itemsize))
    out_bpl = 8 * 4
    per_lane = 2 * in_bpl + 2 * out_bpl
    if lane_block is None:
        tr = (vmem_budget_bytes // per_lane) // 128 * 128
        tr = min(tr, 128 * 1024)          # diminishing returns beyond ~128K lanes
    else:
        tr = (int(lane_block) // 128) * 128
    tr = max(tr, 128)
    if tr >= R:
        tr = R                            # single full-array block (dims == array dims)
    grid = pl.cdiv(R, tr)                 # no jnp.pad; Pallas masks the partial edge block

    # Guard for user overrides / very large C: raise the scoped-VMEM limit if needed.
    est_vmem = per_lane * max(tr, 128)
    vmem_limit = int(est_vmem * 3 // 2) if est_vmem > 14 * 1024 * 1024 else None

    out = pl.pallas_call(
        _circle_loss_kernel,
        out_shape=jax.ShapeDtypeStruct((1, R), jnp.float32),
        grid_spec=pltpu.PrefetchScalarGridSpec(
            num_scalar_prefetch=0,
            grid=(grid,),
            in_specs=[
                pl.BlockSpec((C, tr), lambda i: (0, i)),
                pl.BlockSpec((C, tr), lambda i: (0, i)),
            ],
            out_specs=pl.BlockSpec((1, tr), lambda i: (0, i)),
        ),
        compiler_params=pltpu.CompilerParams(
            dimension_semantics=("parallel",),   # shards the row grid across v7x's 2 TCs
            vmem_limit_bytes=vmem_limit,
        ),
    )(lg, lb)

    per_row = out[0]                                    # (R,) per-row losses
    if reduction == "mean":
        return jnp.mean(per_row)
    # PyTorch else-branch: loss.mean(1).
    return jnp.mean(per_row.reshape(lead), axis=1)


def _multilabel_circle_loss_ref(logits, labels, reduction="mean", inf=1e12):
    """Pure-numpy reference mirroring the PyTorch forward."""
    logits = np.asarray(logits, dtype=np.float64)
    labels = np.asarray(labels, dtype=np.float64)
    s = (1.0 - 2.0 * labels) * logits
    neg = s - labels * inf
    pos = s - (1.0 - labels) * inf
    zeros = np.zeros_like(s[..., :1])
    neg = np.concatenate([neg, zeros], axis=-1)
    pos = np.concatenate([pos, zeros], axis=-1)

    def lse(x):
        m = np.max(x, axis=-1, keepdims=True)
        return (m + np.log(np.sum(np.exp(x - m), axis=-1, keepdims=True)))[..., 0]

    loss = lse(neg) + lse(pos)
    if reduction == "mean":
        return loss.mean()
    return loss.mean(axis=1)


if __name__ == "__main__":
    # 1) Docstring example from the PyTorch module.
    labels_ex = jnp.array([[1, 1, 1, 1], [0, 0, 0, 1]], dtype=jnp.float32)
    logits_ex = jnp.array([[0, 1, 1, 0], [1, 0, 0, 1]], dtype=jnp.float32)
    loss_ex = jax.block_until_ready(
        multilabel_circle_loss_pallas(logits_ex, labels_ex, reduction="mean"))
    ref_ex = _multilabel_circle_loss_ref(np.array(logits_ex), np.array(labels_ex))
    np.testing.assert_allclose(np.array(loss_ex), ref_ex, rtol=1e-5, atol=1e-5)

    # 2) Random (B, C) = (8, 16), reduction='mean'.
    key = jax.random.PRNGKey(0)
    k1, k2, k3, k4, k5, k6 = jax.random.split(key, 6)
    B, C = 8, 16
    logits = jax.random.normal(k1, (B, C), dtype=jnp.float32) * 3.0
    labels = (jax.random.uniform(k2, (B, C)) < 0.3).astype(jnp.float32)
    loss = jax.block_until_ready(
        multilabel_circle_loss_pallas(logits, labels, reduction="mean"))
    ref = _multilabel_circle_loss_ref(np.array(logits), np.array(labels))
    np.testing.assert_allclose(np.array(loss), ref, rtol=1e-5, atol=1e-5)

    # 3) 3-D input (B, N, C) with reduction='none' -> loss.mean(1), shape (B,).
    B3, N3, C3 = 2, 8, 4
    logits3 = jax.random.normal(k3, (B3, N3, C3), dtype=jnp.float32) * 2.0
    labels3 = (jax.random.uniform(k4, (B3, N3, C3)) < 0.5).astype(jnp.float32)
    loss3 = jax.block_until_ready(
        multilabel_circle_loss_pallas(logits3, labels3, reduction="none"))
    ref3 = _multilabel_circle_loss_ref(np.array(logits3), np.array(labels3),
                                       reduction="none")
    np.testing.assert_allclose(np.array(loss3), ref3, rtol=1e-5, atol=1e-5)

    # 4) bf16 inputs (halved HBM traffic); kernel computes in f32.
    logits_bf = logits.astype(jnp.bfloat16)
    labels_bf = labels.astype(jnp.bfloat16)
    loss_bf = jax.block_until_ready(
        multilabel_circle_loss_pallas(logits_bf, labels_bf, reduction="mean"))
    ref_bf = _multilabel_circle_loss_ref(
        np.array(logits_bf.astype(jnp.float32)),
        np.array(labels_bf.astype(jnp.float32)))
    np.testing.assert_allclose(np.array(loss_bf), ref_bf, rtol=1e-4, atol=1e-4)

    # 5) Multi-block grid with a partial (masked) edge block: R = 3*70 = 210,
    #    forced lane_block=128 -> grid=2, second block partial.
    B5, N5, C5 = 3, 70, 4
    logits5 = jax.random.normal(k5, (B5, N5, C5), dtype=jnp.float32) * 2.0
    labels5 = (jax.random.uniform(k6, (B5, N5, C5)) < 0.4).astype(jnp.float32)
    loss5 = jax.block_until_ready(
        multilabel_circle_loss_pallas(logits5, labels5, reduction="none",
                                      lane_block=128))
    ref5 = _multilabel_circle_loss_ref(np.array(logits5), np.array(labels5),
                                       reduction="none")
    np.testing.assert_allclose(np.array(loss5), ref5, rtol=1e-5, atol=1e-5)

    print("KERNEL_OK")
</pallas_src>

<mosaic_0001>
module attributes {stable_mosaic.version = 11 : i64} {
  func.func @_circle_loss_kernel(%arg0: i32, %arg1: memref<4x2xf32, #tpu.memory_space<vmem>>, %arg2: memref<4x2xbf16, #tpu.memory_space<vmem>>, %arg3: memref<1x2xf32, #tpu.memory_space<vmem>>) attributes {dimension_semantics = [#tpu.dimension_semantics<parallel>], iteration_bounds = array<i64: 1>, scalar_prefetch = 0 : i64, scratch_operands = 0 : i64, tpu.core_type = #tpu.core_type<tc>, window_params = [{transform_indices = @transform_0, window_bounds = array<i64: 4, 2>}, {transform_indices = @transform_1, window_bounds = array<i64: 4, 2>}, {transform_indices = @transform_2, window_bounds = array<i64: 1, 2>}]} {
    %c0 = arith.constant 0 : index
    %c0_0 = arith.constant 0 : index
    %0 = vector.load %arg1[%c0, %c0_0] : memref<4x2xf32, #tpu.memory_space<vmem>>, vector<4x2xf32>
    %c0_1 = arith.constant 0 : index
    %c0_2 = arith.constant 0 : index
    %1 = vector.load %arg2[%c0_1, %c0_2] : memref<4x2xbf16, #tpu.memory_space<vmem>>, vector<4x2xbf16>
    %2 = arith.extf %1 : vector<4x2xbf16> to vector<4x2xf32>
    %cst = arith.constant 5.000000e-01 : f32
    %3 = vector.broadcast %cst : f32 to vector<4x2xf32>
    %4 = arith.cmpf ogt, %2, %3 : vector<4x2xf32>
    %cst_3 = arith.constant 2.000000e+00 : f32
    %5 = vector.broadcast %cst_3 : f32 to vector<4x2xf32>
    %6 = arith.mulf %5, %2 : vector<4x2xf32>
    %cst_4 = arith.constant 1.000000e+00 : f32
    %7 = vector.broadcast %cst_4 : f32 to vector<4x2xf32>
    %8 = arith.subf %7, %6 : vector<4x2xf32>
    %9 = arith.mulf %8, %0 : vector<4x2xf32>
    %cst_5 = arith.constant -3.000000e+38 : f32
    %10 = vector.broadcast %cst_5 : f32 to vector<4x2xf32>
    %11 = arith.select %4, %10, %9 : vector<4x2xi1>, vector<4x2xf32>
    %cst_6 = arith.constant dense<0xFF800000> : vector<2xf32>
    %12 = vector.multi_reduction <maximumf>, %11, %cst_6 [0] : vector<4x2xf32> to vector<2xf32>
    %13 = vector.shape_cast %12 : vector<2xf32> to vector<1x2xf32>
    %cst_7 = arith.constant 0.000000e+00 : f32
    %14 = vector.broadcast %cst_7 : f32 to vector<1x2xf32>
    %15 = arith.maximumf %13, %14 : vector<1x2xf32>
    %cst_8 = arith.constant -3.000000e+38 : f32
    %16 = vector.broadcast %cst_8 : f32 to vector<4x2xf32>
    %17 = arith.select %4, %9, %16 : vector<4x2xi1>, vector<4x2xf32>
    %cst_9 = arith.constant dense<0xFF800000> : vector<2xf32>
    %18 = vector.multi_reduction <maximumf>, %17, %cst_9 [0] : vector<4x2xf32> to vector<2xf32>
    %19 = vector.shape_cast %18 : vector<2xf32> to vector<1x2xf32>
    %cst_10 = arith.constant 0.000000e+00 : f32
    %20 = vector.broadcast %cst_10 : f32 to vector<1x2xf32>
    %21 = arith.maximumf %19, %20 : vector<1x2xf32>
    %22 = vector.shape_cast %21 : vector<1x2xf32> to vector<1x2xf32>
    %23 = vector.broadcast %22 : vector<1x2xf32> to vector<4x2xf32>
    %24 = vector.shape_cast %15 : vector<1x2xf32> to vector<1x2xf32>
    %25 = vector.broadcast %24 : vector<1x2xf32> to vector<4x2xf32>
    %26 = arith.select %4, %23, %25 : vector<4x2xi1>, vector<4x2xf32>
    %27 = arith.subf %9, %26 : vector<4x2xf32>
    %28 = math.exp %27 : vector<4x2xf32>
    %cst_11 = arith.constant 0.000000e+00 : f32
    %29 = vector.broadcast %cst_11 : f32 to vector<4x2xf32>
    %30 = arith.select %4, %29, %28 : vector<4x2xi1>, vector<4x2xf32>
    %cst_12 = arith.constant dense<0.000000e+00> : vector<2xf32>
    %31 = vector.multi_reduction <add>, %30, %cst_12 [0] : vector<4x2xf32> to vector<2xf32>
    %32 = vector.shape_cast %31 : vector<2xf32> to vector<1x2xf32>
    %cst_13 = arith.constant 0.000000e+00 : f32
    %33 = vector.broadcast %cst_13 : f32 to vector<1x2xf32>
    %34 = arith.subf %33, %15 : vector<1x2xf32>
    %35 = math.exp %34 : vector<1x2xf32>
    %36 = arith.addf %32, %35 : vector<1x2xf32>
    %cst_14 = arith.constant 0.000000e+00 : f32
    %37 = vector.broadcast %cst_14 : f32 to vector<4x2xf32>
    %38 = arith.select %4, %28, %37 : vector<4x2xi1>, vector<4x2xf32>
    %cst_15 = arith.constant dense<0.000000e+00> : vector<2xf32>
    %39 = vector.multi_reduction <add>, %38, %cst_15 [0] : vector<4x2xf32> to vector<2xf32>
    %40 = vector.shape_cast %39 : vector<2xf32> to vector<1x2xf32>
    %cst_16 = arith.constant 0.000000e+00 : f32
    %41 = vector.broadcast %cst_16 : f32 to vector<1x2xf32>
    %42 = arith.subf %41, %21 : vector<1x2xf32>
    %43 = math.exp %42 : vector<1x2xf32>
    %44 = arith.addf %40, %43 : vector<1x2xf32>
    %45 = math.log %36 : vector<1x2xf32>
    %46 = arith.addf %15, %45 : vector<1x2xf32>
    %47 = math.log %44 : vector<1x2xf32>
    %48 = arith.addf %21, %47 : vector<1x2xf32>
    %49 = arith.addf %46, %48 : vector<1x2xf32>
    %c0_17 = arith.constant 0 : index
    %c0_18 = arith.constant 0 : index
    %50 = vector.load %arg3[%c0_17, %c0_18] : memref<1x2xf32, #tpu.memory_space<vmem>>, vector<1x2xf32>
    tpu.vector_store %arg3[%c0_17, %c0_18], %49 {strides = array<i32>} : memref<1x2xf32, #tpu.memory_space<vmem>>, vector<1x2xf32>,
    return
  }
  func.func @transform_0(%arg0: i32) -> (i32, i32) {
    %c0_i32 = arith.constant 0 : i32
    %c0_i32_0 = arith.constant 0 : i32
    return %c0_i32, %arg0 : i32, i32
  }
  func.func @transform_1(%arg0: i32) -> (i32, i32) {
    %c0_i32 = arith.constant 0 : i32
    %c0_i32_0 = arith.constant 0 : i32
    return %c0_i32, %arg0 : i32, i32
  }
  func.func @transform_2(%arg0: i32) -> (i32, i32) {
    %c0_i32 = arith.constant 0 : i32
    %c0_i32_0 = arith.constant 0 : i32
    return %c0_i32, %arg0 : i32, i32
  }
}

</mosaic_0001>

<bundles_post_ra>
// kernel: tpu_custom_call.1
= control target key start
LH: loop header
LB: loop body
LE: loop exit
PB: predicated region body
PF: predicated region fallthrough
CT: control target
= control target key end

     0   :  { %s165_s0 = inlined_call_operand.vmem [shape: f32[4,2], index: 0, kind: input, shape index: {}]   ;;  %s166_s1 = inlined_call_operand.vmem [shape: bf16[4,2], index: 1, kind: input, shape index: {}]   ;;  %s167_s2 = inlined_call_operand.hbm [shape: f32[1,2], index: 2, kind: output, shape index: {}]  }
   0x1   :  { %v13_v0 = vld [vmem:[%s166_s1] sm:$0x3] }
   0x2   :  { %v14_v1 = vunpack.c.l.bf16 %v13_v0 }
   0x3   :  { %7 = vsyncpa [#allocation3], 0  ;;  %v12_v3 = vld [vmem:[%s165_s0] sm:$0xf]  ;;  %vm20_vm1 = vcmask 11264   ;;  %s122_s0 = smov [#allocation2]  }
   0x4   :  { %v16_v2 = vmul.f32 2.0, %v14_v1  ;;  %vm144_vm0 = vcmp.gt.f32.partialorder %v14_v1, 0.5  ;;  %s81_s1 = sshll.u32 %s122_s0, 4  ;;  %vm73_vm2 = vcmask 8192   ;;  %s82_s1 = int_to_ptr.vmem [resolvable:$true] %s81_s1 }
   0x5   :  { %s100_s13 = scalar_lea.vmem %s82_s1, 16  ;;  %s104_s14 = scalar_lea.vmem %s82_s1, 32 }
   0x6   :  { %v17_v4 = vsub.f32 1.0, %v16_v2  ;;  %p101_p0 = scmp.ne.s32.totalorder %s82_s1, %s100_s13  ;;  %p105_p1 = scmp.lt.s32.totalorder %s82_s1, %s82_s1 }
   0x7   :  { %p106_p2 = scmp.lt.s32.totalorder %s104_s14, %s100_s13 }
   0x8   :  { %v18_v6 = vmul.f32 %v17_v4, %v12_v3 }
   0x9   :  { %p107_p3 = por %p106_p2, %p105_p1 }
   0xa   :  { %v19_v7 = vsel %vm144_vm0, -3e+38, %v18_v6  ;;  %v29_v8 = vsel %vm144_vm0, %v18_v6, -3e+38 }
   0xb   :  { %v21_v9 = vsel %vm20_vm1, %v19_v7, -inf  ;;  %v30_v10 = vsel %vm20_vm1, %v29_v8, -inf  ;;  %p108_p4 = pnand %p107_p3, %p101_p0 }
   0xc   :  { %v22_v11 = vrot.slane %v21_v9, 4  ;;  %v31_v12 = vrot.slane %v30_v10, 4 }
   0xe   :  { %v23_v13 = vmax.f32 %v21_v9, %v22_v11  ;;  %v32_v14 = vmax.f32 %v30_v10, %v31_v12 }
  0x10   :  { %v24_v15 = vrot.slane %v23_v13, 2  ;;  %v33_v16 = vrot.slane %v32_v14, 2 }
  0x12   :  { %v25_v17 = vmax.f32 %v23_v13, %v24_v15  ;;  %v34_v18 = vmax.f32 %v32_v14, %v33_v16 }
  0x14   :  { %v26_v19 = vrot.slane %v25_v17, 1  ;;  %v35_v20 = vrot.slane %v34_v18, 1 }
  0x16   :  { %v27_v21 = vmax.f32 %v25_v17, %v26_v19  ;;  %v36_v22 = vmax.f32 %v34_v18, %v35_v20 }
  0x18   :  { %v28_v23 = vmax.f32 %v27_v21, 0.0  ;;  %v37_v24 = vmax.f32 %v36_v22, 0.0 }
  0x1a   :  { %v38_v25 = vsel %vm144_vm0, %v37_v24, %v28_v23  ;;  %v50_v28 = vsub.f32 0.0, %v28_v23  ;;  %v62_v29 = vsub.f32 0.0, %v37_v24 }
  0x1b   :  { %v39_v26 = vsub.f32 %v18_v6, %v38_v25 }
  0x1c   :  { %v51_v30 = vmul.f32 1.442695, %v50_v28  ;;  %v63_v31 = vmul.f32 1.442695, %v62_v29 }
  0x1d   :  { %v40_v27 = vmul.f32 1.442695, %v39_v26 }
  0x1f   :  { %90 = vpow2.f32 %v40_v27 }
  0x20   :  { %92 = vpow2.f32 %v51_v30 }
  0x21   :  { %94 = vpow2.f32 %v63_v31 }
  0x2c   :  { %v91_v32 = vpop.eup %90 }
  0x2d   :  { %v42_v33 = vsel %vm144_vm0, 0.0, %v91_v32  ;;  %v54_v34 = vsel %vm144_vm0, %v91_v32, 0.0  ;;  %v93_v45 = vpop.eup %92 }
  0x2e   :  { %v43_v35 = vsel %vm20_vm1, %v42_v33, 0.0  ;;  %v55_v36 = vsel %vm20_vm1, %v54_v34, 0.0  ;;  %v95_v48 = vpop.eup %94 }
  0x2f   :  { %v44_v37 = vrot.slane %v43_v35, 4  ;;  %v56_v38 = vrot.slane %v55_v36, 4 }
  0x31   :  { %v45_v39 = vadd.f32 %v44_v37, %v43_v35  ;;  %v57_v40 = vadd.f32 %v56_v38, %v55_v36 }
  0x33   :  { %v46_v41 = vrot.slane %v45_v39, 2  ;;  %v58_v42 = vrot.slane %v57_v40, 2 }
  0x35   :  { %v47_v43 = vadd.f32 %v46_v41, %v45_v39  ;;  %v59_v44 = vadd.f32 %v58_v42, %v57_v40 }
  0x37   :  { %v48_v46 = vrot.slane %v47_v43, 1  ;;  %v60_v47 = vrot.slane %v59_v44, 1 }
  0x39   :  { %v49_v49 = vadd.f32 %v48_v46, %v47_v43  ;;  %v61_v50 = vadd.f32 %v60_v47, %v59_v44 }
  0x3b   :  { %v53_v51 = vadd.f32 %v93_v45, %v49_v49  ;;  %v65_v52 = vadd.f32 %v95_v48, %v61_v50 }
  0x3d   :  { %96 = vlog2.f32 %v53_v51 }
  0x3e   :  { %98 = vlog2.f32 %v65_v52 }
  0x4a   :  { %v97_v53 = vpop.eup %96 }
  0x4b   :  { %v99_v54 = vpop.eup %98  ;;  %v67_v55 = vmul.f32 0.6931472, %v97_v53 }
  0x4c   :  { %v70_v56 = vmul.f32 0.6931472, %v99_v54 }
  0x4d   :  { %v68_v57 = vadd.f32 %v67_v55, %v28_v23 }
  0x4e   :  { %v71_v58 = vadd.f32 %v70_v56, %v37_v24 }
  0x50   :  { %v72_v59 = vadd.f32 %v71_v58, %v68_v57 }
  0x52   :  { %74 = vst.msk [vmem:[#allocation2] sm:$0x1] %vm73_vm2, %v72_v59 }
  0x53   :  { %111 = shalt.err (!%p108_p4)
}
  0x54   :  { %84 = dma.vmem_to_hbm [thread:$0]  %s82_s1, 16, %s167_s2, [#allocation3]  }
  0x55   :  { %120 = dma.done.wait [#allocation3], 16  }
  0x56   :  { %121 = vsyncadd [#allocation3], 4294967280 }
  0x57   :  { %88 = vsyncpa [#allocation3], 1 }

</bundles_post_ra>
